<compile_context>
chip_gen: v5e
topology: v5e:2x2
jax: 0.10.0
libtpu: 0.0.40
codegen_flags: <defaults>
</compile_context>

<pallas_src>
import functools
import numpy as np
import jax
import jax.numpy as jnp
from jax import lax
from jax.experimental import pallas as pl
from jax.experimental.pallas import tpu as pltpu


def _round_up(x, m):
    return ((x + m - 1) // m) * m


def _tensorcores_per_chip():
    """Best-effort trace-time query of TensorCores per chip (v7x=2, v5e/v6e=1)."""
    try:
        info = pltpu.get_tpu_info()
    except Exception:
        return 1
    for name in ("num_tensorcores", "tensorcore_count", "num_cores",
                 "cores_per_chip", "tensor_cores_per_chip"):
        v = getattr(info, name, None)
        if isinstance(v, int) and v >= 1:
            return v
    return 1


def build_weights(rates, scales, kernel_size):
    """weights[i,j] = sin(rates[i,j]*X0 + scales[i,j]*X1) * hann, torch layout (Cin,Cout,kh,kw)."""
    kh, kw = kernel_size
    t = jnp.arange(kw, dtype=jnp.float32)
    f = jnp.arange(kh, dtype=jnp.float32)
    X0 = jnp.broadcast_to(t[None, :], (kh, kw))   # np.meshgrid(t, f)[0]
    X1 = jnp.broadcast_to(f[:, None], (kh, kw))   # np.meshgrid(t, f)[1]
    WW = jnp.asarray(np.outer(np.hanning(kh), np.hanning(kw)), dtype=jnp.float32)
    return jnp.sin(rates[:, :, None, None] * X0[None, None]
                   + scales[:, :, None, None] * X1[None, None]) * WW[None, None]


def _gemm_kernel(w_ref, p_ref, o_ref):
    # w_ref: (C_out_pad, K_pad)   -- single (8,128)-multiple weight tile, resident
    # p_ref: (K_pad, bpb*HW)      -- lane-dense im2col columns for this batch block
    # o_ref: (bpb, C_out_pad, HW) -- lane-dense output (HW % 128 == 0 or full extent)
    bpb, _, hw = o_ref.shape
    for i in range(bpb):          # bpb is tiny & static (1 on multi-TC chips, N on single-TC)
        o_ref[i] = jnp.dot(w_ref[...], p_ref[:, i * hw:(i + 1) * hw],
                           preferred_element_type=jnp.float32).astype(o_ref.dtype)


@functools.partial(jax.jit, static_argnames=("kernel_size", "padding"))
def rsconv_transpose2d(x_nchw, rates, scales, kernel_size, padding):
    """Forward pass of rsconvTranspose2d. x_nchw: (N, in_c, H, W) -> (N, out_c, H_out, W_out)."""
    in_c, out_c = rates.shape
    kh, kw = kernel_size
    pad_h, pad_w = padding
    n, c, h, w = x_nchw.shape
    assert c == in_c

    ph, pw = kh - 1 - pad_h, kw - 1 - pad_w      # may be negative (torch crops); lax.pad handles it
    h_out = h + kh - 1 - 2 * pad_h
    w_out = w + kw - 1 - 2 * pad_w
    assert h_out > 0 and w_out > 0, "output spatial size must be positive"
    hw = h_out * w_out
    k_dim = in_c * kh * kw

    # ---- weights: sin(rate*t + scale*f)*hann, spatially flipped, K ordered (c_in, ky, kx) ----
    # (Runs inside the same jit as the conv: a handful of tiny fused ops, no extra dispatches.
    #  If rates/scales are static, w_mat can be cached outside and passed in instead.)
    weights = build_weights(rates, scales, kernel_size)                    # (Cin, Cout, kh, kw)
    wf = weights[:, :, ::-1, ::-1]                                         # flip -> padded VALID corr
    w_mat = jnp.transpose(wf, (1, 0, 2, 3)).reshape(out_c, k_dim)          # (Cout, K)

    # Pad C_out to an 8-multiple (whole-sublane stores) and K to a 128-multiple (clean vreg tile).
    c_out_pad = _round_up(out_c, 8)
    k_pad = _round_up(k_dim, 128)
    w_mat = jnp.pad(w_mat, ((0, c_out_pad - out_c), (0, k_pad - k_dim)))   # (8, 128)

    # ---- im2col without the 5-D relayout: cols ordered (n, y, x), K ordered (c, ky, kx) ----
    zero = jnp.zeros((), x_nchw.dtype)
    x_t = jnp.transpose(x_nchw, (1, 0, 2, 3))                              # (Cin, N, H, W), tiny
    xp = lax.pad(x_t, zero, ((0, 0, 0), (0, 0, 0), (ph, ph, 0), (pw, pw, 0)))  # neg pad == crop
    taps = [xp[:, :, ky:ky + h_out, kx:kx + w_out]
            for ky in range(kh) for kx in range(kw)]                       # (Cin, N, Hout, Wout) each
    patches = jnp.stack(taps, axis=1).reshape(k_dim, n * hw)               # (K, N*HW), straight reshape
    patches = jnp.pad(patches, ((0, k_pad - k_dim), (0, 0)))               # (K_pad, N*HW)

    # ---- grid: over batch; collapse to a single step on single-TC chips (v5e/v6e) ----
    tc = _tensorcores_per_chip()
    if tc >= 2 and n > 1 and hw % 128 == 0:
        num_blocks = n            # one batch per step; "parallel" axis feeds both v7x TCs
    else:
        num_blocks = 1            # single-TC: one step (halves fixed per-step overhead)
    bpb = n // num_blocks
    # TODO(synk): for much larger H*W / C_in, derive the column tile from the VMEM budget
    # (pltpu.get_tpu_info().vmem_capacity_bytes; only 64 MiB on v7x) instead of whole batches.

    out_mat = pl.pallas_call(
        _gemm_kernel,
        out_shape=jax.ShapeDtypeStruct((n, c_out_pad, hw), x_nchw.dtype),
        grid_spec=pltpu.PrefetchScalarGridSpec(
            num_scalar_prefetch=0,
            grid=(num_blocks,),
            in_specs=[
                pl.BlockSpec((c_out_pad, k_pad), lambda b: (0, 0)),        # weight slab (resident)
                pl.BlockSpec((k_pad, bpb * hw), lambda b: (0, b)),         # this block's columns
            ],
            out_specs=pl.BlockSpec((bpb, c_out_pad, hw), lambda b: (b, 0, 0)),
        ),
        compiler_params=pltpu.CompilerParams(
            dimension_semantics=("parallel",),
            # Let XLA fuse the pad/slice/stack im2col producer into the patches operand.
            allow_input_fusion=[False, True],
        ),
    )(w_mat, patches)

    # Output is already (N, C_out_pad, HW): just drop channel padding and unflatten space.
    return out_mat[:, :out_c, :].reshape(n, out_c, h_out, w_out)


@functools.partial(jax.jit, static_argnames=("kernel_size", "padding"))
def _reference(x, rates, scales, kernel_size, padding):
    """Independent scatter-add implementation of F.conv_transpose2d(stride=1)."""
    kh, kw = kernel_size
    pad_h, pad_w = padding
    n, cin, h, w = x.shape
    weights = build_weights(rates, scales, kernel_size)          # (Cin, Cout, kh, kw)
    cout = weights.shape[1]
    out_full = jnp.zeros((n, cout, h + kh - 1, w + kw - 1), jnp.float32)
    for ky in range(kh):
        for kx in range(kw):
            contrib = jnp.einsum("nchw,cd->ndhw", x, weights[:, :, ky, kx])
            out_full = out_full.at[:, :, ky:ky + h, kx:kx + w].add(contrib)
    return out_full[:, :, pad_h:h + kh - 1 - pad_h, pad_w:w + kw - 1 - pad_w]


if __name__ == "__main__":
    # Module config (small, consistent with the PyTorch module's __init__ signature).
    in_channel, out_channel = 4, 6
    kernel_size = (5, 5)
    padding = (2, 2)
    batch, H, W = 2, 16, 16

    key = jax.random.PRNGKey(0)
    k_x, k_r = jax.random.split(key)
    # Deterministic parameter init mirroring torch.rand / torch.zeros.
    rates = jax.random.uniform(k_r, (in_channel, out_channel), dtype=jnp.float32)
    scales = jnp.zeros((in_channel, out_channel), dtype=jnp.float32)
    x = jax.random.normal(k_x, (batch, in_channel, H, W), dtype=jnp.float32)

    out = jax.block_until_ready(
        rsconv_transpose2d(x, rates, scales, kernel_size=kernel_size, padding=padding))
    ref = jax.block_until_ready(
        _reference(x, rates, scales, kernel_size=kernel_size, padding=padding))

    h_out = H + kernel_size[0] - 1 - 2 * padding[0]
    w_out = W + kernel_size[1] - 1 - 2 * padding[1]
    assert out.shape == (batch, out_channel, h_out, w_out)
    assert jnp.allclose(out, ref, atol=1e-4, rtol=1e-4), "mismatch vs conv_transpose2d reference"

    print("KERNEL_OK")
</pallas_src>

<mosaic_0001>
module attributes {stable_mosaic.version = 11 : i64} {
  func.func @_gemm_kernel(%arg0: i32, %arg1: memref<8x128xf32, #tpu.memory_space<vmem>>, %arg2: memref<128x512xf32, #tpu.memory_space<vmem>>, %arg3: memref<2x8x256xf32, #tpu.memory_space<vmem>>) attributes {dimension_semantics = [#tpu.dimension_semantics<parallel>], iteration_bounds = array<i64: 1>, scalar_prefetch = 0 : i64, scratch_operands = 0 : i64, tpu.core_type = #tpu.core_type<tc>, window_params = [{pipeline_mode = #tpu.pipeline_mode<synchronous>, transform_indices = @transform_0, window_bounds = array<i64: 8, 128>}, {transform_indices = @transform_1, window_bounds = array<i64: 128, 512>}, {transform_indices = @transform_2, window_bounds = array<i64: 2, 8, 256>}]} {
    %c0 = arith.constant 0 : index
    %c0_0 = arith.constant 0 : index
    %0 = vector.load %arg1[%c0, %c0_0] : memref<8x128xf32, #tpu.memory_space<vmem>>, vector<8x128xf32>
    %c0_1 = arith.constant 0 : index
    %c0_2 = arith.constant 0 : index
    %1 = vector.load %arg2[%c0_1, %c0_2] : memref<128x512xf32, #tpu.memory_space<vmem>>, vector<128x256xf32>
    %cst = arith.constant dense<0.000000e+00> : vector<8x256xf32>
    %2 = tpu.matmul %0, %1, %cst {dimension_numbers = #tpu.dot_dimension_numbers<[1], [0], [0], [1], [0, 0, 1, 1], [], []>} : vector<8x128xf32>, vector<128x256xf32>, vector<8x256xf32> -> vector<8x256xf32>
    %c0_3 = arith.constant 0 : index
    %c0_4 = arith.constant 0 : index
    %c0_5 = arith.constant 0 : index
    %3 = vector.load %arg3[%c0_3, %c0_4, %c0_5] : memref<2x8x256xf32, #tpu.memory_space<vmem>>, vector<1x8x256xf32>
    %4 = vector.shape_cast %3 : vector<1x8x256xf32> to vector<8x256xf32>
    %5 = vector.shape_cast %2 : vector<8x256xf32> to vector<1x8x256xf32>
    tpu.vector_store %arg3[%c0_3, %c0_4, %c0_5], %5 {strides = array<i32>} : memref<2x8x256xf32, #tpu.memory_space<vmem>>, vector<1x8x256xf32>,
    %c0_6 = arith.constant 0 : index
    %c0_7 = arith.constant 0 : index
    %6 = vector.load %arg1[%c0_6, %c0_7] : memref<8x128xf32, #tpu.memory_space<vmem>>, vector<8x128xf32>
    %c0_8 = arith.constant 0 : index
    %c256 = arith.constant 256 : index
    %7 = vector.load %arg2[%c0_8, %c256] : memref<128x512xf32, #tpu.memory_space<vmem>>, vector<128x256xf32>
    %cst_9 = arith.constant dense<0.000000e+00> : vector<8x256xf32>
    %8 = tpu.matmul %6, %7, %cst_9 {dimension_numbers = #tpu.dot_dimension_numbers<[1], [0], [0], [1], [0, 0, 1, 1], [], []>} : vector<8x128xf32>, vector<128x256xf32>, vector<8x256xf32> -> vector<8x256xf32>
    %c1 = arith.constant 1 : index
    %c0_10 = arith.constant 0 : index
    %c0_11 = arith.constant 0 : index
    %9 = vector.load %arg3[%c1, %c0_10, %c0_11] : memref<2x8x256xf32, #tpu.memory_space<vmem>>, vector<1x8x256xf32>
    %10 = vector.shape_cast %9 : vector<1x8x256xf32> to vector<8x256xf32>
    %11 = vector.shape_cast %8 : vector<8x256xf32> to vector<1x8x256xf32>
    tpu.vector_store %arg3[%c1, %c0_10, %c0_11], %11 {strides = array<i32>} : memref<2x8x256xf32, #tpu.memory_space<vmem>>, vector<1x8x256xf32>,
    return
  }
  func.func @transform_0(%arg0: i32) -> (i32, i32) {
    %c0_i32 = arith.constant 0 : i32
    %c0_i32_0 = arith.constant 0 : i32
    %c0_i32_1 = arith.constant 0 : i32
    return %c0_i32, %c0_i32_0 : i32, i32
  }
  func.func @transform_1(%arg0: i32) -> (i32, i32) {
    %c0_i32 = arith.constant 0 : i32
    %c0_i32_0 = arith.constant 0 : i32
    return %c0_i32, %arg0 : i32, i32
  }
  func.func @transform_2(%arg0: i32) -> (i32, i32, i32) {
    %c0_i32 = arith.constant 0 : i32
    %c0_i32_0 = arith.constant 0 : i32
    %c0_i32_1 = arith.constant 0 : i32
    return %arg0, %c0_i32, %c0_i32_0 : i32, i32, i32
  }
}

</mosaic_0001>

<bundles_post_ra>
// kernel: rsconv_transpose2d.2
= control target key start
LH: loop header
LB: loop body
LE: loop exit
PB: predicated region body
PF: predicated region fallthrough
CT: control target
= control target key end

     0   :  { %v541_v1 = vlaneseq  ;;  %s1033_s0 = inlined_call_operand.vmem [shape: f32[8,128], index: 0, kind: input, shape index: {}]   ;;  %s1034_s1 = inlined_call_operand.vmem [shape: f32[100,512], index: 1, kind: input, shape index: {}]   ;;  %s1035_s2 = inlined_call_operand.<no memory space> [shape: f32[], index: 2, kind: input, shape index: {}]   ;;  %s1036_s3 = inlined_call_operand.vmem [shape: f32[2,8,256], index: 3, kind: output, shape index: {}]  }
   0x1   :  { %v8_v0 = vstv %s1035_s2  ;;  %v835_v3 = vld [vmem:[%s1034_s1 + $0x190] sm:$0xff]  ;;  %v836_v5 = vld [vmem:[%s1034_s1 + $0x198] sm:$0xff]  ;;  %v833_v6 = vld [vmem:[%s1034_s1 + $0x180] sm:$0xff] }
   0x2   :  { %739 = vmatpush.msra.mxu2 %v8_v0  ;;  %759 = vmatpush.msra.mxu3 %v8_v0  ;;  %v542_v2 = vshrl.u32 %v541_v1, 7  ;;  %v834_v7 = vld [vmem:[%s1034_s1 + $0x188] sm:$0xff]  ;;  %v831_v10 = vld [vmem:[%s1034_s1 + $0x170] sm:$0xff]  ;;  %v832_v11 = vld [vmem:[%s1034_s1 + $0x178] sm:$0xff] }
   0x3   :  { %664 = vmatpush.msra.mxu0 %v8_v0  ;;  %684 = vmatpush.msra.mxu1 %v8_v0  ;;  %v829_v14 = vld [vmem:[%s1034_s1 + $0x160] sm:$0xff]  ;;  %v830_v15 = vld [vmem:[%s1034_s1 + $0x168] sm:$0xff]  ;;  %v827_v16 = vld [vmem:[%s1034_s1 + $0x150] sm:$0xff] }
   0x4   :  { %740 = vmatpush.msra.mxu2 %v8_v0  ;;  %760 = vmatpush.msra.mxu3 %v8_v0  ;;  %v543_v4 = vadd.s32 96, %v542_v2  ;;  %v828_v17 = vld [vmem:[%s1034_s1 + $0x158] sm:$0xff]  ;;  %v825_v18 = vld [vmem:[%s1034_s1 + $0x140] sm:$0xff]  ;;  %v826_v19 = vld [vmem:[%s1034_s1 + $0x148] sm:$0xff] }
   0x5   :  { %665 = vmatpush.msra.mxu0 %v8_v0  ;;  %685 = vmatpush.msra.mxu1 %v8_v0  ;;  %v823_v20 = vld [vmem:[%s1034_s1 + $0x130] sm:$0xff]  ;;  %v824_v21 = vld [vmem:[%s1034_s1 + $0x138] sm:$0xff]  ;;  %v821_v22 = vld [vmem:[%s1034_s1 + $0x120] sm:$0xff] }
   0x6   :  { %741 = vmatpush.msra.mxu2 %v8_v0  ;;  %761 = vmatpush.msra.mxu3 %v8_v0  ;;  %vm544_vm0 = vcmp.lt.s32.totalorder %v543_v4, 100  ;;  %v822_v23 = vld [vmem:[%s1034_s1 + $0x128] sm:$0xff]  ;;  %v819_v24 = vld [vmem:[%s1034_s1 + $0x110] sm:$0xff]  ;;  %v820_v25 = vld [vmem:[%s1034_s1 + $0x118] sm:$0xff] }
   0x7   :  { %666 = vmatpush.msra.mxu0 %v8_v0  ;;  %686 = vmatpush.msra.mxu1 %v8_v0  ;;  %v567_v8 = vsel %vm544_vm0, %v835_v3, %v8_v0  ;;  %v578_v9 = vsel %vm544_vm0, %v836_v5, %v8_v0  ;;  %v545_v12 = vsel %vm544_vm0, %v833_v6, %v8_v0  ;;  %v817_v26 = vld [vmem:[%s1034_s1 + $0x100] sm:$0xff]  ;;  %v818_v27 = vld [vmem:[%s1034_s1 + $0x108] sm:$0xff]  ;;  %v815_v28 = vld [vmem:[%s1034_s1 + $0xf0] sm:$0xff] }
   0x8   :  { %v556_v13 = vsel %vm544_vm0, %v834_v7, %v8_v0  ;;  %742 = vmatpush.msra.mxu2 %v567_v8  ;;  %762 = vmatpush.msra.mxu3 %v578_v9  ;;  %v816_v29 = vld [vmem:[%s1034_s1 + $0xf8] sm:$0xff]  ;;  %v813_v30 = vld [vmem:[%s1034_s1 + $0xe0] sm:$0xff]  ;;  %v814_v31 = vld [vmem:[%s1034_s1 + $0xe8] sm:$0xff] }
   0x9   :  { %667 = vmatpush.msra.mxu0 %v545_v12  ;;  %687 = vmatpush.msra.mxu1 %v556_v13  ;;  %v811_v32 = vld [vmem:[%s1034_s1 + $0xd0] sm:$0xff]  ;;  %v812_v33 = vld [vmem:[%s1034_s1 + $0xd8] sm:$0xff]  ;;  %v809_v34 = vld [vmem:[%s1034_s1 + $0xc0] sm:$0xff] }
   0xa   :  { %743 = vmatpush.msra.mxu2 %v831_v10  ;;  %763 = vmatpush.msra.mxu3 %v832_v11  ;;  %v810_v35 = vld [vmem:[%s1034_s1 + $0xc8] sm:$0xff]  ;;  %v807_v36 = vld [vmem:[%s1034_s1 + $0xb0] sm:$0xff]  ;;  %v808_v37 = vld [vmem:[%s1034_s1 + $0xb8] sm:$0xff] }
   0xb   :  { %668 = vmatpush.msra.mxu0 %v829_v14  ;;  %688 = vmatpush.msra.mxu1 %v830_v15  ;;  %v805_v38 = vld [vmem:[%s1034_s1 + $0xa0] sm:$0xff]  ;;  %v806_v39 = vld [vmem:[%s1034_s1 + $0xa8] sm:$0xff]  ;;  %v803_v40 = vld [vmem:[%s1034_s1 + $0x90] sm:$0xff] }
   0xc   :  { %744 = vmatpush.msra.mxu2 %v827_v16  ;;  %764 = vmatpush.msra.mxu3 %v828_v17  ;;  %v804_v41 = vld [vmem:[%s1034_s1 + $0x98] sm:$0xff]  ;;  %v801_v42 = vld [vmem:[%s1034_s1 + $0x80] sm:$0xff]  ;;  %v802_v43 = vld [vmem:[%s1034_s1 + $0x88] sm:$0xff] }
   0xd   :  { %669 = vmatpush.msra.mxu0 %v825_v18  ;;  %689 = vmatpush.msra.mxu1 %v826_v19  ;;  %v799_v44 = vld [vmem:[%s1034_s1 + $0x70] sm:$0xff]  ;;  %v800_v45 = vld [vmem:[%s1034_s1 + $0x78] sm:$0xff]  ;;  %v797_v46 = vld [vmem:[%s1034_s1 + $0x60] sm:$0xff] }
   0xe   :  { %745 = vmatpush.msra.mxu2 %v823_v20  ;;  %765 = vmatpush.msra.mxu3 %v824_v21  ;;  %v798_v47 = vld [vmem:[%s1034_s1 + $0x68] sm:$0xff]  ;;  %v795_v48 = vld [vmem:[%s1034_s1 + $0x50] sm:$0xff]  ;;  %v796_v49 = vld [vmem:[%s1034_s1 + $0x58] sm:$0xff] }
   0xf   :  { %670 = vmatpush.msra.mxu0 %v821_v22  ;;  %690 = vmatpush.msra.mxu1 %v822_v23  ;;  %v793_v50 = vld [vmem:[%s1034_s1 + $0x40] sm:$0xff]  ;;  %v794_v51 = vld [vmem:[%s1034_s1 + $0x48] sm:$0xff]  ;;  %v791_v52 = vld [vmem:[%s1034_s1 + $0x30] sm:$0xff] }
  0x10   :  { %746 = vmatpush.msra.mxu2 %v819_v24  ;;  %766 = vmatpush.msra.mxu3 %v820_v25  ;;  %v792_v53 = vld [vmem:[%s1034_s1 + $0x38] sm:$0xff]  ;;  %v789_v54 = vld [vmem:[%s1034_s1 + $0x20] sm:$0xff]  ;;  %v790_v55 = vld [vmem:[%s1034_s1 + $0x28] sm:$0xff] }
  0x11   :  { %671 = vmatpush.msra.mxu0 %v817_v26  ;;  %691 = vmatpush.msra.mxu1 %v818_v27  ;;  %v787_v56 = vld [vmem:[%s1034_s1 + $0x10] sm:$0xff]  ;;  %v788_v57 = vld [vmem:[%s1034_s1 + $0x18] sm:$0xff]  ;;  %v706_v58 = vld [vmem:[%s1033_s0] sm:$0xff] }
  0x12   :  { %747 = vmatpush.msra.mxu2 %v815_v28  ;;  %767 = vmatpush.msra.mxu3 %v816_v29  ;;  %v13_v59 = vld [vmem:[%s1034_s1] sm:$0xff]  ;;  %v786_v60 = vld [vmem:[%s1034_s1 + $0x8] sm:$0xff] }
  0x13   :  { %672 = vmatpush.msra.mxu0 %v813_v30  ;;  %692 = vmatpush.msra.mxu1 %v814_v31 }
  0x14   :  { %748 = vmatpush.msra.mxu2 %v811_v32  ;;  %768 = vmatpush.msra.mxu3 %v812_v33 }
  0x15   :  { %673 = vmatpush.msra.mxu0 %v809_v34  ;;  %693 = vmatpush.msra.mxu1 %v810_v35 }
  0x16   :  { %749 = vmatpush.msra.mxu2 %v807_v36  ;;  %769 = vmatpush.msra.mxu3 %v808_v37 }
  0x17   :  { %674 = vmatpush.msra.mxu0 %v805_v38  ;;  %694 = vmatpush.msra.mxu1 %v806_v39 }
  0x18   :  { %750 = vmatpush.msra.mxu2 %v803_v40  ;;  %770 = vmatpush.msra.mxu3 %v804_v41 }
  0x19   :  { %675 = vmatpush.msra.mxu0 %v801_v42  ;;  %695 = vmatpush.msra.mxu1 %v802_v43 }
  0x1a   :  { %751 = vmatpush.msra.mxu2 %v799_v44  ;;  %771 = vmatpush.msra.mxu3 %v800_v45 }
  0x1b   :  { %676 = vmatpush.msra.mxu0 %v797_v46  ;;  %696 = vmatpush.msra.mxu1 %v798_v47 }
  0x1c   :  { %752 = vmatpush.msra.mxu2 %v795_v48  ;;  %772 = vmatpush.msra.mxu3 %v796_v49 }
  0x1d   :  { %677 = vmatpush.msra.mxu0 %v793_v50  ;;  %697 = vmatpush.msra.mxu1 %v794_v51 }
  0x1e   :  { %753 = vmatpush.msra.mxu2 %v791_v52  ;;  %773 = vmatpush.msra.mxu3 %v792_v53 }
  0x1f   :  { %678 = vmatpush.msra.mxu0 %v789_v54  ;;  %698 = vmatpush.msra.mxu1 %v790_v55 }
  0x20   :  { %754 = vmatpush.msra.mxu2 %v787_v56  ;;  %774 = vmatpush.msra.mxu3 %v788_v57 }
  0x21   :  { %755 = vmatmul.f32.vlgmr.msra.gmra.mxu2 %v706_v58  ;;  %775 = vmatmul.f32.vlgmr.msra.gmra.mxu3 %v706_v58 }
  0x22   :  { %679 = vmatpush.msra.mxu0 %v13_v59  ;;  %699 = vmatpush.msra.mxu1 %v786_v60 }
  0x23   :  { %680 = vmatmul.f32.vlgmr.msra.gmra.mxu0 %v706_v58  ;;  %700 = vmatmul.f32.vlgmr.msra.gmra.mxu1 %v706_v58 }
  0xa0   :  { %v681_v61 = vpop.f32.mrf.mxu0  ;;  %v701_v62 = vpop.f32.mrf.mxu1 }
  0xa1   :  { %704 = vst [vmem:[%s1036_s3] sm:$0xff] %v681_v61 }
  0xa2   :  { %705 = vst [vmem:[%s1036_s3 + $0x8] sm:$0xff] %v701_v62 }
  0xa4   :  { %v756_v63 = vpop.f32.mrf.mxu2  ;;  %v776_v0 = vpop.f32.mrf.mxu3 }
  0xa5   :  { %837 = vst [vmem:[%s1036_s3 + $0x10] sm:$0xff] %v756_v63 }
  0xa6   :  { %838 = vst [vmem:[%s1036_s3 + $0x18] sm:$0xff] %v776_v0 }

</bundles_post_ra>
